<compile_context>
chip_gen: v7x
topology: tpu7x:2x2x1
jax: 0.10.0
libtpu: 0.0.40
codegen_flags: <defaults>
</compile_context>

<pallas_src>
import jax
import jax.numpy as jnp
from jax import lax
from jax.experimental import pallas as pl
from jax.experimental.pallas import tpu as pltpu


def cross_attention_kernel(h_ref, kv_ref, wqn_ref, wkv_ref, wo_ref,
                           out_ref, attn_ref):
    """Single-shot cross-attention; all operands resident in VMEM.

    Pre-packed weights (see prepare_cross_attention_params):
      wqn_ref : (D, D)    = -(Wq^T)      (score negation folded in)
      wkv_ref : (2, D, D) = [Wk^T, Wv^T] (single weight DMA for K and V)
      wo_ref  : (D, D)    =  Wo^T
    """
    w_dtype = wqn_ref.dtype
    h = h_ref[...]                                   # (Lq, D)
    kv = kv_ref[...]                                 # (Lk, D)
    h_c = h.astype(w_dtype)
    kv_c = kv.astype(w_dtype)

    # Projections on the MXU, f32 accumulation. qn = -(h @ Wq^T).
    qn = jnp.dot(h_c, wqn_ref[...], preferred_element_type=jnp.float32)   # (Lq, D)
    k = jnp.dot(kv_c, wkv_ref[0], preferred_element_type=jnp.float32)     # (Lk, D)
    v = jnp.dot(kv_c, wkv_ref[1], preferred_element_type=jnp.float32)     # (Lk, D)

    # scores = -(q @ k^T) == qn @ k^T; contract last dims of both operands
    # directly so no k.T is materialized.
    scores = lax.dot_general(qn, k, (((1,), (1,)), ((), ())),
                             preferred_element_type=jnp.float32)          # (Lq, Lk)

    # softmax over the last axis in float32 (matches scores.float()).
    m = jnp.max(scores, axis=-1, keepdims=True)
    e = jnp.exp(scores - m)
    denom = jnp.sum(e, axis=-1, keepdims=True)
    attn = e * pl.reciprocal(denom, approx=False)                         # (Lq, Lk)

    # dropout(p=0.1, training=False) -> identity (eval-mode forward).
    # TODO(synk): add stochastic dropout via pltpu.prng_random_bits if a
    #             training-mode forward is ever required.

    ctx = jnp.dot(attn, v, preferred_element_type=jnp.float32)            # (Lq, D)
    out = jnp.dot(ctx.astype(w_dtype), wo_ref[...],
                  preferred_element_type=jnp.float32)                     # (Lq, D)

    out_ref[...] = out.astype(out_ref.dtype)
    attn_ref[...] = attn.astype(attn_ref.dtype)


def prepare_cross_attention_params(wq, wk, wv, wo, weight_dtype=jnp.bfloat16):
    """One-time weight packing (call at parameter-setup time, NOT per forward).

    PyTorch Linear weights are (out, in); we pre-transpose so the kernel does
    y = x @ W, fold the score negation into Wq, stack Wk/Wv into one array
    (one DMA / in_spec), and cast to bf16 by default (halves weight HBM
    traffic, native MXU rate). Pass weight_dtype=jnp.float32 for exact f32
    module numerics.
    """
    wqn = (-wq.T).astype(weight_dtype)                           # (D, D)
    wkv = jnp.stack([wk.T, wv.T], axis=0).astype(weight_dtype)   # (2, D, D)
    wo_t = wo.T.astype(weight_dtype)                             # (D, D)
    return wqn, wkv, wo_t


def cross_attention(hidden_states, key_value_states, wqn, wkv, wo_t):
    """hidden_states: (Lq, D); key_value_states: (Lk, D); weights pre-packed by
    prepare_cross_attention_params. Returns (attn_output, attn_weights)."""
    Lq, D = hidden_states.shape
    Lk, _ = key_value_states.shape
    dtype = hidden_states.dtype

    full = lambda shape: pl.BlockSpec(shape, lambda: (0,) * len(shape))

    out_shapes = (
        jax.ShapeDtypeStruct((Lq, D), dtype),    # attn_output
        jax.ShapeDtypeStruct((Lq, Lk), dtype),   # attn_weights
    )

    # Everything (weights + activations) is well under 1 MiB, so a single
    # grid=() invocation with whole-array blocks is right; VMEM limit is sized
    # to the footprint (v7x only has 64 MiB physical per TensorCore).
    # TODO(synk): if called over a batch of independent sequences, add a
    #             leading grid axis with dimension_semantics=("parallel",) so
    #             both v7x TensorCores are used and >=128 query rows fill an
    #             MXU pass; a single Lq=8 call is overhead/DMA bound.
    return pl.pallas_call(
        cross_attention_kernel,
        out_shape=out_shapes,
        grid=(),
        in_specs=[
            full((Lq, D)),
            full((Lk, D)),
            full(wqn.shape),
            full(wkv.shape),
            full(wo_t.shape),
        ],
        out_specs=(
            full((Lq, D)),
            full((Lq, Lk)),
        ),
        compiler_params=pltpu.CompilerParams(vmem_limit_bytes=4 << 20),
    )(hidden_states, key_value_states, wqn, wkv, wo_t)


def cross_attention_ref(hidden_states, key_value_states, wq, wk, wv, wo,
                        weight_dtype=jnp.float32):
    """Pure-JAX reference mirroring the PyTorch module (eval mode). When
    weight_dtype != f32 it applies the same casts the kernel does, so the
    comparison isolates kernel correctness from the bf16 quantization."""
    f32 = jnp.float32
    qd = lambda x: x.astype(weight_dtype).astype(f32)
    q = qd(hidden_states) @ qd(wq.T)
    k = qd(key_value_states) @ qd(wk.T)
    v = qd(key_value_states) @ qd(wv.T)
    scores = -(q @ k.T)
    attn = jax.nn.softmax(scores.astype(f32), axis=-1)
    out = qd(attn @ v) @ qd(wo.T)
    return out, attn


if __name__ == "__main__":
    # Module default dim=192; small seq lengths consistent with the 2-D forward
    # (the module uses key_states.transpose(1, 0), so inputs are rank-2).
    Lq, Lk, D = 8, 16, 192

    key = jax.random.PRNGKey(0)
    kh, kkv, k1, k2, k3, k4 = jax.random.split(key, 6)

    hidden_states = jax.random.normal(kh, (Lq, D), dtype=jnp.float32)
    key_value_states = jax.random.normal(kkv, (Lk, D), dtype=jnp.float32)

    # PyTorch Linear weight layout: (out_features, in_features).
    scale = 1.0 / jnp.sqrt(D)
    wq = jax.random.uniform(k1, (D, D), jnp.float32, -scale, scale)
    wk = jax.random.uniform(k2, (D, D), jnp.float32, -scale, scale)
    wv = jax.random.uniform(k3, (D, D), jnp.float32, -scale, scale)
    wo = jax.random.uniform(k4, (D, D), jnp.float32, -scale, scale)

    # One-time weight packing (transpose / negate-fold / stack / bf16 cast).
    wqn, wkv, wo_t = prepare_cross_attention_params(wq, wk, wv, wo)

    out, attn = cross_attention(hidden_states, key_value_states, wqn, wkv, wo_t)
    out, attn = jax.block_until_ready((out, attn))

    # Reference applying the same bf16 weight/activation casts as the kernel.
    out_ref, attn_ref = cross_attention_ref(
        hidden_states, key_value_states, wq, wk, wv, wo,
        weight_dtype=jnp.bfloat16)

    assert out.shape == (Lq, D) and attn.shape == (Lq, Lk)
    assert jnp.allclose(out, out_ref, atol=1e-3, rtol=1e-3), (
        "out max abs err", float(jnp.max(jnp.abs(out - out_ref))))
    assert jnp.allclose(attn, attn_ref, atol=1e-4, rtol=1e-4), (
        "attn max abs err", float(jnp.max(jnp.abs(attn - attn_ref))))

    print("KERNEL_OK")
</pallas_src>

<mosaic_0001>
module attributes {stable_mosaic.version = 11 : i64} {
  func.func @cross_attention_kernel(%arg0: memref<8x192xf32, #tpu.memory_space<vmem>>, %arg1: memref<16x192xf32, #tpu.memory_space<vmem>>, %arg2: memref<192x192xbf16, #tpu.memory_space<vmem>>, %arg3: memref<2x192x192xbf16, #tpu.memory_space<vmem>>, %arg4: memref<192x192xbf16, #tpu.memory_space<vmem>>, %arg5: memref<8x192xf32, #tpu.memory_space<vmem>>, %arg6: memref<8x16xf32, #tpu.memory_space<vmem>>) attributes {dimension_semantics = [], scalar_prefetch = 0 : i64, scratch_operands = 0 : i64, tpu.core_type = #tpu.core_type<tc>} {
    %c0 = arith.constant 0 : index
    %c0_0 = arith.constant 0 : index
    %0 = vector.load %arg0[%c0, %c0_0] : memref<8x192xf32, #tpu.memory_space<vmem>>, vector<8x192xf32>
    %c0_1 = arith.constant 0 : index
    %c0_2 = arith.constant 0 : index
    %1 = vector.load %arg1[%c0_1, %c0_2] : memref<16x192xf32, #tpu.memory_space<vmem>>, vector<16x192xf32>
    %2 = arith.truncf %0 : vector<8x192xf32> to vector<8x192xbf16>
    %3 = arith.truncf %1 : vector<16x192xf32> to vector<16x192xbf16>
    %c0_3 = arith.constant 0 : index
    %c0_4 = arith.constant 0 : index
    %4 = vector.load %arg2[%c0_3, %c0_4] : memref<192x192xbf16, #tpu.memory_space<vmem>>, vector<192x192xbf16>
    %cst = arith.constant dense<0.000000e+00> : vector<8x192xf32>
    %5 = tpu.matmul %2, %4, %cst {dimension_numbers = #tpu.dot_dimension_numbers<[1], [0], [0], [1], [0, 0, 1, 1], [], []>} : vector<8x192xbf16>, vector<192x192xbf16>, vector<8x192xf32> -> vector<8x192xf32>
    %c0_5 = arith.constant 0 : index
    %c0_6 = arith.constant 0 : index
    %c0_7 = arith.constant 0 : index
    %6 = vector.load %arg3[%c0_5, %c0_6, %c0_7] : memref<2x192x192xbf16, #tpu.memory_space<vmem>>, vector<1x192x192xbf16>
    %7 = vector.shape_cast %6 : vector<1x192x192xbf16> to vector<192x192xbf16>
    %cst_8 = arith.constant dense<0.000000e+00> : vector<16x192xf32>
    %8 = tpu.matmul %3, %7, %cst_8 {dimension_numbers = #tpu.dot_dimension_numbers<[1], [0], [0], [1], [0, 0, 1, 1], [], []>} : vector<16x192xbf16>, vector<192x192xbf16>, vector<16x192xf32> -> vector<16x192xf32>
    %c1 = arith.constant 1 : index
    %c0_9 = arith.constant 0 : index
    %c0_10 = arith.constant 0 : index
    %9 = vector.load %arg3[%c1, %c0_9, %c0_10] : memref<2x192x192xbf16, #tpu.memory_space<vmem>>, vector<1x192x192xbf16>
    %10 = vector.shape_cast %9 : vector<1x192x192xbf16> to vector<192x192xbf16>
    %cst_11 = arith.constant dense<0.000000e+00> : vector<16x192xf32>
    %11 = tpu.matmul %3, %10, %cst_11 {dimension_numbers = #tpu.dot_dimension_numbers<[1], [0], [0], [1], [0, 0, 1, 1], [], []>} : vector<16x192xbf16>, vector<192x192xbf16>, vector<16x192xf32> -> vector<16x192xf32>
    %cst_12 = arith.constant dense<0.000000e+00> : vector<8x16xf32>
    %12 = tpu.matmul %5, %8, %cst_12 {dimension_numbers = #tpu.dot_dimension_numbers<[1], [1], [0], [0], [0, 0, 1, 0], [], []>} : vector<8x192xf32>, vector<16x192xf32>, vector<8x16xf32> -> vector<8x16xf32>
    %cst_13 = arith.constant dense<0xFF800000> : vector<8xf32>
    %13 = vector.multi_reduction <maximumf>, %12, %cst_13 [1] : vector<8x16xf32> to vector<8xf32>
    %14 = vector.shape_cast %13 : vector<8xf32> to vector<8x1xf32>
    %15 = vector.broadcast %14 : vector<8x1xf32> to vector<8x16xf32>
    %16 = arith.subf %12, %15 : vector<8x16xf32>
    %17 = math.exp %16 : vector<8x16xf32>
    %cst_14 = arith.constant dense<0.000000e+00> : vector<8xf32>
    %18 = vector.multi_reduction <add>, %17, %cst_14 [1] : vector<8x16xf32> to vector<8xf32>
    %19 = vector.shape_cast %18 : vector<8xf32> to vector<8x1xf32>
    %20 = tpu.reciprocal %19 : vector<8x1xf32> -> vector<8x1xf32>
    %21 = vector.broadcast %20 : vector<8x1xf32> to vector<8x16xf32>
    %22 = arith.mulf %17, %21 : vector<8x16xf32>
    %cst_15 = arith.constant dense<0.000000e+00> : vector<8x192xf32>
    %23 = tpu.matmul %22, %11, %cst_15 {dimension_numbers = #tpu.dot_dimension_numbers<[1], [0], [0], [1], [0, 0, 1, 1], [], []>} : vector<8x16xf32>, vector<16x192xf32>, vector<8x192xf32> -> vector<8x192xf32>
    %24 = arith.truncf %23 : vector<8x192xf32> to vector<8x192xbf16>
    %c0_16 = arith.constant 0 : index
    %c0_17 = arith.constant 0 : index
    %25 = vector.load %arg4[%c0_16, %c0_17] : memref<192x192xbf16, #tpu.memory_space<vmem>>, vector<192x192xbf16>
    %cst_18 = arith.constant dense<0.000000e+00> : vector<8x192xf32>
    %26 = tpu.matmul %24, %25, %cst_18 {dimension_numbers = #tpu.dot_dimension_numbers<[1], [0], [0], [1], [0, 0, 1, 1], [], []>} : vector<8x192xbf16>, vector<192x192xbf16>, vector<8x192xf32> -> vector<8x192xf32>
    %c0_19 = arith.constant 0 : index
    %c0_20 = arith.constant 0 : index
    %27 = vector.load %arg5[%c0_19, %c0_20] : memref<8x192xf32, #tpu.memory_space<vmem>>, vector<8x192xf32>
    tpu.vector_store %arg5[%c0_19, %c0_20], %26 {strides = array<i32>} : memref<8x192xf32, #tpu.memory_space<vmem>>, vector<8x192xf32>,
    %c0_21 = arith.constant 0 : index
    %c0_22 = arith.constant 0 : index
    %28 = vector.load %arg6[%c0_21, %c0_22] : memref<8x16xf32, #tpu.memory_space<vmem>>, vector<8x16xf32>
    tpu.vector_store %arg6[%c0_21, %c0_22], %22 {strides = array<i32>} : memref<8x16xf32, #tpu.memory_space<vmem>>, vector<8x16xf32>,
    return
  }
}

</mosaic_0001>

<bundles_post_ra>
// kernel: tpu_custom_call.1
= control target key start
LH: loop header
LB: loop body
LE: loop exit
PB: predicated region body
PF: predicated region fallthrough
CT: control target
= control target key end

     0   :  { %12 = vsyncpa [#allocation3], 0  ;;  %s1646_s0 = inlined_call_operand.hbm [shape: f32[8,192], index: 0, kind: input, shape index: {}]   ;;  %s1647_s1 = inlined_call_operand.hbm [shape: f32[16,192], index: 1, kind: input, shape index: {}]   ;;  %s1648_s2 = inlined_call_operand.hbm [shape: bf16[192,192], index: 2, kind: input, shape index: {}]   ;;  %s1649_s3 = inlined_call_operand.hbm [shape: bf16[2,192,192], index: 3, kind: input, shape index: {}]   ;;  %s1650_s4 = inlined_call_operand.hbm [shape: bf16[192,192], index: 4, kind: input, shape index: {}]   ;;  %s1651_s5 = inlined_call_operand.hbm [shape: f32[8,192], index: 5, kind: output, shape index: {0}]   ;;  %s1652_s6 = inlined_call_operand.hbm [shape: f32[8,16], index: 6, kind: output, shape index: {1}]  }
   0x1   :  { %13 = vsyncpa [#allocation6], 0 }
   0x2   :  { %14 = vsyncpa [#allocation9], 0 }
   0x3   :  { %15 = vsyncpa [#allocation4], 0 }
   0x4   :  { %16 = vsyncpa [#allocation13], 0  ;;  %s1494_s21 = smov [#allocation5]   ;;  %s1330_s25 = scalar_lea.hbm %s1647_s1, 512 }
   0x5   :  { %s32_s22 = sshll.u32 %s1494_s21, 4  ;;  %p1331_p0 = scmp.ne.s32.totalorder %s1647_s1, %s1330_s25  ;;  %s33_s22 = int_to_ptr.vmem [resolvable:$true] %s32_s22 }
   0x6   :  { %p1334_p1 = scmp.lt.u32.totalorder %s1330_s25, %s1647_s1 }
   0x8   :  { %p1336_p2 = pnand %p1334_p1, %p1331_p0 }
   0xa   :  { %1339 = shalt.err (!%p1336_p2)
}
   0xb   :  { %s1340_s30 = scalar_lea.vmem %s33_s22, 512  ;;  %p1345_p4 = scmp.lt.s32.totalorder %s33_s22, %s33_s22 }
   0xc   :  { %p1341_p3 = scmp.ne.s32.totalorder %s33_s22, %s1340_s30  ;;  %p1346_p5 = scmp.lt.s32.totalorder %s1340_s30, %s1340_s30 }
   0xe   :  { %p1347_p6 = por %p1346_p5, %p1345_p4 }
  0x10   :  { %p1348_p7 = pnand %p1347_p6, %p1341_p3 }
  0x12   :  { %1351 = shalt.err (!%p1348_p7)
}
  0x13   :  { %s1495_s7 = smov 256   ;;  %s1496_s8 = smov 16  }
  0x14   :  { %38 = dma.hbm_to_vmem [thread:$0]  %s1647_s1, 512, %s33_s22, [#allocation6], %s1495_s7, %s1495_s7, %s1496_s8  }
  0x15   :  { %s1497_s11 = smov [#allocation8]   ;;  %s1498_s13 = smov [#allocation2]  }
  0x16   :  { %s56_s12 = sshll.u32 %s1497_s11, 4  ;;  %s23_s14 = sshll.u32 %s1498_s13, 4  ;;  %s57_s12 = int_to_ptr.vmem [resolvable:$true] %s56_s12  ;;  %s24_s14 = int_to_ptr.vmem [resolvable:$true] %s23_s14 }
  0x17   :  { %s1352_s17 = scalar_lea.hbm %s1649_s3, 6144 }
  0x18   :  { %p1353_p8 = scmp.ne.s32.totalorder %s1649_s3, %s1352_s17  ;;  %p1356_p9 = scmp.lt.u32.totalorder %s1352_s17, %s1649_s3 }
  0x1a   :  { %p1358_p10 = pnand %p1356_p9, %p1353_p8 }
  0x1c   :  { %1361 = shalt.err (!%p1358_p10)
}
  0x1d   :  { %s1362_s1 = scalar_lea.vmem %s57_s12, 6144  ;;  %p1367_p12 = scmp.lt.s32.totalorder %s57_s12, %s57_s12 }
  0x1e   :  { %p1363_p11 = scmp.ne.s32.totalorder %s57_s12, %s1362_s1  ;;  %p1368_p13 = scmp.lt.s32.totalorder %s1362_s1, %s1362_s1 }
  0x20   :  { %p1369_p0 = por %p1368_p13, %p1367_p12 }
  0x22   :  { %p1370_p1 = pnand %p1369_p0, %p1363_p11 }
  0x24   :  { %1373 = shalt.err (!%p1370_p1)
}
  0x25   :  { %s1499_s22 = smov 128   ;;  %s1500_s23 = smov 8  }
  0x26   :  { %62 = dma.hbm_to_vmem [thread:$0]  %s1649_s3, 6144, %s57_s12, [#allocation9], %s1499_s22, %s1499_s22, %s1500_s23  }
  0x27   :  { %s1374_s28 = scalar_lea.hbm %s1646_s0, 256 }
  0x28   :  { %p1375_p2 = scmp.ne.s32.totalorder %s1646_s0, %s1374_s28  ;;  %p1378_p3 = scmp.lt.u32.totalorder %s1374_s28, %s1646_s0 }
  0x2a   :  { %p1380_p4 = pnand %p1378_p3, %p1375_p2 }
  0x2c   :  { %1383 = shalt.err (!%p1380_p4)
}
  0x2d   :  { %s1384_s9 = scalar_lea.vmem %s24_s14, 256  ;;  %p1389_p6 = scmp.lt.s32.totalorder %s24_s14, %s24_s14 }
  0x2e   :  { %p1385_p5 = scmp.ne.s32.totalorder %s24_s14, %s1384_s9  ;;  %p1390_p7 = scmp.lt.s32.totalorder %s1384_s9, %s1384_s9 }
  0x30   :  { %p1391_p8 = por %p1390_p7, %p1389_p6 }
  0x32   :  { %p1392_p9 = pnand %p1391_p8, %p1385_p5 }
  0x34   :  { %1395 = shalt.err (!%p1392_p9)
}
  0x35   :  { %26 = dma.hbm_to_vmem [thread:$0]  %s1646_s0, 256, %s24_s14, [#allocation3]  }
  0x36   :  { %s1501_s11 = smov [#allocation7]   ;;  %s1502_s13 = smov [#allocation10]  }
  0x37   :  { %s44_s12 = sshll.u32 %s1501_s11, 4  ;;  %s68_s15 = sshll.u32 %s1502_s13, 4  ;;  %s45_s12 = int_to_ptr.vmem [resolvable:$true] %s44_s12  ;;  %s69_s15 = int_to_ptr.vmem [resolvable:$true] %s68_s15 }
  0x38   :  { %s1396_s18 = scalar_lea.hbm %s1648_s2, 3072 }
  0x39   :  { %p1397_p10 = scmp.ne.s32.totalorder %s1648_s2, %s1396_s18  ;;  %p1400_p11 = scmp.lt.u32.totalorder %s1396_s18, %s1648_s2 }
  0x3b   :  { %p1402_p12 = pnand %p1400_p11, %p1397_p10 }
  0x3d   :  { %1405 = shalt.err (!%p1402_p12)
}
  0x3e   :  { %s1406_s0 = scalar_lea.vmem %s45_s12, 3072  ;;  %p1411_p0 = scmp.lt.s32.totalorder %s45_s12, %s45_s12 }
  0x3f   :  { %p1407_p13 = scmp.ne.s32.totalorder %s45_s12, %s1406_s0  ;;  %p1412_p1 = scmp.lt.s32.totalorder %s1406_s0, %s1406_s0 }
  0x41   :  { %p1413_p2 = por %p1412_p1, %p1411_p0 }
  0x43   :  { %p1414_p3 = pnand %p1413_p2, %p1407_p13 }
  0x45   :  { %1417 = shalt.err (!%p1414_p3)
}
  0x46   :  { %50 = dma.hbm_to_vmem [thread:$0]  %s1648_s2, 3072, %s45_s12, [#allocation6], %s1499_s22, %s1499_s22, %s1500_s23  }
  0x47   :  { %s1418_s27 = scalar_lea.hbm %s1650_s4, 3072 }
  0x48   :  { %p1419_p4 = scmp.ne.s32.totalorder %s1650_s4, %s1418_s27  ;;  %p1422_p5 = scmp.lt.u32.totalorder %s1418_s27, %s1650_s4 }
  0x4a   :  { %p1424_p6 = pnand %p1422_p5, %p1419_p4 }
  0x4c   :  { %1427 = shalt.err (!%p1424_p6)
}
  0x4d   :  { %s1428_s8 = scalar_lea.vmem %s69_s15, 3072  ;;  %p1433_p8 = scmp.lt.s32.totalorder %s69_s15, %s69_s15 }
  0x4e   :  { %p1429_p7 = scmp.ne.s32.totalorder %s69_s15, %s1428_s8  ;;  %p1434_p9 = scmp.lt.s32.totalorder %s1428_s8, %s1428_s8 }
  0x50   :  { %p1435_p10 = por %p1434_p9, %p1433_p8 }
  0x52   :  { %p1436_p11 = pnand %p1435_p10, %p1429_p7 }
  0x54   :  { %1439 = shalt.err (!%p1436_p11)
}
  0x55   :  { %74 = dma.hbm_to_vmem [thread:$0]  %s1650_s4, 3072, %s69_s15, [#allocation9], %s1499_s22, %s1499_s22, %s1500_s23  }
  0x56   :  { %1484 = dma.done.wait [#allocation3], 256  }
  0x57   :  { %1485 = vsyncadd [#allocation3], 4294967040 }
  0x58   :  { %1486 = dma.done.wait [#allocation6], 3584  }
  0x59   :  { %1487 = vsyncadd [#allocation6], 4294963712 }
  0x5a   :  { %1488 = dma.done.wait [#allocation9], 9216  }
  0x5b   :  { %1489 = vsyncadd [#allocation9], 4294958080  ;;  %v1182_v0 = vld [vmem:[#allocation8 + $0x4] ss:$8 sps:$4 sm:$0xff]   ;;  %v1184_v1 = vld [vmem:[#allocation8] ss:$8 sps:$4 sm:$0xff]  }
  0x5c   :  { %437 = vmatprep.subr.bf16.mxu1 %v1182_v0  ;;  %v1185_v2 = vld [vmem:[#allocation8 + $0x14] ss:$8 sps:$4 sm:$0xff]   ;;  %v1187_v3 = vld [vmem:[#allocation8 + $0x10] ss:$8 sps:$4 sm:$0xff]   ;;  %v1188_v4 = vld [vmem:[#allocation8 + $0x24] ss:$8 sps:$4 sm:$0xff]  }
  0x5d   :  { %438 = vmatpush1.bf16.msra.mxu1 %v1184_v1  ;;  %v1190_v5 = vld [vmem:[#allocation7 + $0x4] ss:$8 sps:$4 sm:$0xff]   ;;  %v1193_v6 = vld [vmem:[#allocation7] ss:$8 sps:$4 sm:$0xff]   ;;  %v1196_v8 = vld [vmem:[#allocation7 + $0x14] ss:$8 sps:$4 sm:$0xff]  }
  0x5e   :  { %439 = vmatprep.subr.bf16.mxu1 %v1185_v2  ;;  %249 = vmatprep.subr.bf16.mxu0 %v1190_v5  ;;  %v1192_v7 = vld [vmem:[#allocation8 + $0x20] ss:$8 sps:$4 sm:$0xff]   ;;  %v1199_v9 = vld [vmem:[#allocation7 + $0x10] ss:$8 sps:$4 sm:$0xff]   ;;  %v1194_v10 = vld [vmem:[#allocation8 + $0x34] ss:$8 sps:$4 sm:$0xff]  }
  0x5f   :  { %250 = vmatpush1.bf16.msra.mxu0 %v1193_v6  ;;  %v1202_v11 = vld [vmem:[#allocation7 + $0x24] ss:$8 sps:$4 sm:$0xff]   ;;  %v1198_v12 = vld [vmem:[#allocation8 + $0x30] ss:$8 sps:$4 sm:$0xff]   ;;  %v1205_v13 = vld [vmem:[#allocation7 + $0x20] ss:$8 sps:$4 sm:$0xff]  }
  0x60   :  { %251 = vmatprep.subr.bf16.mxu0 %v1196_v8  ;;  %v1200_v14 = vld [vmem:[#allocation8 + $0x44] ss:$8 sps:$4 sm:$0xff]   ;;  %v1208_v15 = vld [vmem:[#allocation7 + $0x34] ss:$8 sps:$4 sm:$0xff]   ;;  %v1204_v16 = vld [vmem:[#allocation8 + $0x40] ss:$8 sps:$4 sm:$0xff]  }
  0x61   :  { %440 = vmatpush1.bf16.msra.mxu1 %v1187_v3  ;;  %v1206_v17 = vld [vmem:[#allocation8 + $0x54] ss:$8 sps:$4 sm:$0xff]   ;;  %v1211_v18 = vld [vmem:[#allocation7 + $0x30] ss:$8 sps:$4 sm:$0xff]   ;;  %v1214_v19 = vld [vmem:[#allocation7 + $0x44] ss:$8 sps:$4 sm:$0xff]  }
  0x62   :  { %441 = vmatprep.subr.bf16.mxu1 %v1188_v4  ;;  %v1210_v20 = vld [vmem:[#allocation8 + $0x50] ss:$8 sps:$4 sm:$0xff]   ;;  %v1217_v21 = vld [vmem:[#allocation7 + $0x40] ss:$8 sps:$4 sm:$0xff]   ;;  %v1212_v22 = vld [vmem:[#allocation8 + $0x64] ss:$8 sps:$4 sm:$0xff]  }
  0x63   :  { %252 = vmatpush1.bf16.msra.mxu0 %v1199_v9  ;;  %v1220_v23 = vld [vmem:[#allocation7 + $0x54] ss:$8 sps:$4 sm:$0xff]   ;;  %v1216_v24 = vld [vmem:[#allocation8 + $0x60] ss:$8 sps:$4 sm:$0xff]   ;;  %v1223_v26 = vld [vmem:[#allocation7 + $0x50] ss:$8 sps:$4 sm:$0xff]  }
  0x64   :  { %253 = vmatprep.subr.bf16.mxu0 %v1202_v11  ;;  %v1218_v25 = vld [vmem:[#allocation8 + $0x74] ss:$8 sps:$4 sm:$0xff]   ;;  %v1226_v27 = vld [vmem:[#allocation7 + $0x64] ss:$8 sps:$4 sm:$0xff]   ;;  %v1222_v28 = vld [vmem:[#allocation8 + $0x70] ss:$8 sps:$4 sm:$0xff]  }
  0x65   :  { %442 = vmatpush1.bf16.msra.mxu1 %v1192_v7  ;;  %v1229_v29 = vld [vmem:[#allocation7 + $0x60] ss:$8 sps:$4 sm:$0xff]   ;;  %v1224_v30 = vld [vmem:[#allocation8 + $0x84] ss:$8 sps:$4 sm:$0xff]   ;;  %v1232_v31 = vld [vmem:[#allocation7 + $0x74] ss:$8 sps:$4 sm:$0xff]  }
  0x66   :  { %443 = vmatprep.subr.bf16.mxu1 %v1194_v10  ;;  %v94_v32 = vld [vmem:[#allocation5 + $0x8] sm:$0xff]  ;;  %v96_v33 = vld [vmem:[#allocation5 + $0x18] sm:$0xff]  ;;  %vm245_vm0 = vcmask 523264   ;;  %v93_v50 = vld [vmem:[#allocation5] sm:$0xff]  ;;  %vm747_vm2 = vcmask 130048   ;;  %s1504_s4 = smov [#allocation12]  }
  0x67   :  { %254 = vmatpush1.bf16.msra.mxu0 %v1205_v13  ;;  %v1228_v34 = vld [vmem:[#allocation8 + $0x80] ss:$8 sps:$4 sm:$0xff]   ;;  %v100_v35 = vpack.c.bf16 %v96_v33, %v94_v32  ;;  %v1230_v36 = vld [vmem:[#allocation8 + $0x94] ss:$8 sps:$4 sm:$0xff]   ;;  %v1235_v37 = vld [vmem:[#allocation7 + $0x70] ss:$8 sps:$4 sm:$0xff]  }
  0x68   :  { %255 = vmatprep.subr.bf16.mxu0 %v1208_v15  ;;  %v1238_v38 = vld [vmem:[#allocation7 + $0x84] ss:$8 sps:$4 sm:$0xff]   ;;  %v92_v39 = vld [vmem:[#allocation2 + $0x8] sm:$0xff]  ;;  %v1241_v42 = vld [vmem:[#allocation7 + $0x80] ss:$8 sps:$4 sm:$0xff]   ;;  %s1042_s22 = sshll.u32 %s1504_s4, 4  ;;  %s1043_s22 = int_to_ptr.vmem [resolvable:$true] %s1042_s22 }
  0x69   :  { %444 = vmatpush1.bf16.msra.mxu1 %v1198_v12  ;;  %1106 = vmatprep.mubr.msk.bf16.mxu1 %vm245_vm0, %v100_v35  ;;  %v1234_v40 = vld [vmem:[#allocation8 + $0x90] ss:$8 sps:$4 sm:$0xff]   ;;  %v98_v41 = vpack.c.bf16 %v92_v39, %v92_v39  ;;  %v1236_v43 = vld [vmem:[#allocation8 + $0xa4] ss:$8 sps:$4 sm:$0xff]   ;;  %v1244_v44 = vld [vmem:[#allocation7 + $0x94] ss:$8 sps:$4 sm:$0xff]   ;;  %p1445_p13 = scmp.lt.s32.totalorder %s1043_s22, %s1043_s22 }
  0x6a   :  { %445 = vmatprep.subr.bf16.mxu1 %v1200_v14  ;;  %v1240_v45 = vld [vmem:[#allocation8 + $0xa0] ss:$8 sps:$4 sm:$0xff]   ;;  %v1247_v46 = vld [vmem:[#allocation7 + $0x90] ss:$8 sps:$4 sm:$0xff]   ;;  %v1242_v47 = vld [vmem:[#allocation8 + $0xb4] ss:$8 sps:$4 sm:$0xff]  }
  0x6b   :  { %256 = vmatpush1.bf16.msra.mxu0 %v1211_v18  ;;  %1081 = vmatprep.mubr.msk.bf16.mxu0 %vm245_vm0, %v98_v41  ;;  %v1248_v48 = vld [vmem:[#allocation7 + $0xa4] ss:$8 sps:$4 sm:$0xff]   ;;  %v1246_v49 = vld [vmem:[#allocation8 + $0xb0] ss:$8 sps:$4 sm:$0xff]   ;;  %v1250_v52 = vld [vmem:[#allocation7 + $0xa0] ss:$8 sps:$4 sm:$0xff]  }
  0x6c   :  { %257 = vmatprep.subr.bf16.mxu0 %v1214_v19  ;;  %v95_v51 = vld [vmem:[#allocation5 + $0x10] sm:$0xff]  ;;  %v1256_v57 = vld [vmem:[#allocation8 + $0xc4] ss:$8 sps:$4 sm:$0xff]   ;;  %v1254_v58 = vld [vmem:[#allocation8 + $0xc0] ss:$8 sps:$4 sm:$0xff]   ;;  %s1440_s23 = scalar_lea.vmem %s1043_s22, 128 }
  0x6d   :  { %446 = vmatpush1.bf16.msra.mxu1 %v1204_v16  ;;  %v1251_v53 = vld [vmem:[#allocation7 + $0xb4] ss:$8 sps:$4 sm:$0xff]   ;;  %v99_v54 = vpack.c.bf16 %v95_v51, %v93_v50  ;;  %v1253_v55 = vld [vmem:[#allocation7 + $0xb0] ss:$8 sps:$4 sm:$0xff]   ;;  %v1262_v62 = vld [vmem:[#allocation8 + $0xe4] ss:$8 sps:$4 sm:$0xff]   ;;  %p1441_p12 = scmp.ne.s32.totalorder %s1043_s22, %s1440_s23  ;;  %p1446_p0 = scmp.lt.s32.totalorder %s1440_s23, %s1440_s23 }
  0x6e   :  { %447 = vmatprep.subr.bf16.mxu1 %v1206_v17  ;;  %v91_v56 = vld [vmem:[#allocation2] sm:$0xff]  ;;  %v1260_v63 = vld [vmem:[#allocation8 + $0xe0] ss:$8 sps:$4 sm:$0xff]   ;;  %v1268_v2 = vld [vmem:[#allocation8 + $0x104] ss:$8 sps:$4 sm:$0xff]  }
  0x6f   :  { %258 = vmatpush1.bf16.msra.mxu0 %v1217_v21  ;;  %v97_v59 = vpack.c.bf16 %v91_v56, %v91_v56  ;;  %v1259_v60 = vld [vmem:[#allocation8 + $0xd4] ss:$8 sps:$4 sm:$0xff]   ;;  %v1257_v61 = vld [vmem:[#allocation8 + $0xd0] ss:$8 sps:$4 sm:$0xff]   ;;  %v1266_v3 = vld [vmem:[#allocation8 + $0x100] ss:$8 sps:$4 sm:$0xff]   ;;  %p1447_p1 = por %p1446_p0, %p1445_p13 }
  0x70   :  { %259 = vmatprep.subr.bf16.mxu0 %v1220_v23  ;;  %v1265_v0 = vld [vmem:[#allocation8 + $0xf4] ss:$8 sps:$4 sm:$0xff]   ;;  %v1263_v1 = vld [vmem:[#allocation8 + $0xf0] ss:$8 sps:$4 sm:$0xff]   ;;  %v1274_v6 = vld [vmem:[#allocation8 + $0x124] ss:$8 sps:$4 sm:$0xff]  }
  0x71   :  { %448 = vmatpush1.bf16.msra.mxu1 %v1210_v20  ;;  %v1271_v4 = vld [vmem:[#allocation8 + $0x114] ss:$8 sps:$4 sm:$0xff]   ;;  %v1269_v5 = vld [vmem:[#allocation8 + $0x110] ss:$8 sps:$4 sm:$0xff]   ;;  %v1272_v7 = vld [vmem:[#allocation8 + $0x120] ss:$8 sps:$4 sm:$0xff]   ;;  %p1448_p2 = pnand %p1447_p1, %p1441_p12 }
  0x72   :  { %449 = vmatprep.subr.bf16.mxu1 %v1212_v22  ;;  %v1277_v8 = vld [vmem:[#allocation8 + $0x134] ss:$8 sps:$4 sm:$0xff]   ;;  %v1275_v9 = vld [vmem:[#allocation8 + $0x130] ss:$8 sps:$4 sm:$0xff]   ;;  %v1280_v10 = vld [vmem:[#allocation8 + $0x144] ss:$8 sps:$4 sm:$0xff]  }
  0x73   :  { %260 = vmatpush1.bf16.msra.mxu0 %v1223_v26  ;;  %v1278_v11 = vld [vmem:[#allocation8 + $0x140] ss:$8 sps:$4 sm:$0xff]   ;;  %v1283_v12 = vld [vmem:[#allocation8 + $0x154] ss:$8 sps:$4 sm:$0xff]   ;;  %v1281_v13 = vld [vmem:[#allocation8 + $0x150] ss:$8 sps:$4 sm:$0xff]  }
  0x74   :  { %261 = vmatprep.subr.bf16.mxu0 %v1226_v27  ;;  %v1286_v14 = vld [vmem:[#allocation8 + $0x164] ss:$8 sps:$4 sm:$0xff]   ;;  %v1284_v15 = vld [vmem:[#allocation8 + $0x160] ss:$8 sps:$4 sm:$0xff]   ;;  %v1289_v16 = vld [vmem:[#allocation8 + $0x174] ss:$8 sps:$4 sm:$0xff]  }
  0x75   :  { %450 = vmatpush1.bf16.msra.mxu1 %v1216_v24  ;;  %v1287_v17 = vld [vmem:[#allocation8 + $0x170] ss:$8 sps:$4 sm:$0xff]   ;;  %vm1162_vm1 = vmpackc.low %vm245_vm0, %vm245_vm0  ;;  %v1298_v50 = vld [vmem:[#allocation10 + $0x24] ss:$8 sps:$4 sm:$0xff]  }
  0x76   :  { %451 = vmatprep.subr.bf16.mxu1 %v1218_v25  ;;  %v1296_v51 = vld [vmem:[#allocation10 + $0x20] ss:$8 sps:$4 sm:$0xff]   ;;  %v1307_v56 = vld [vmem:[#allocation10 + $0x54] ss:$8 sps:$4 sm:$0xff]  }
  0x77   :  { %262 = vmatpush1.bf16.msra.mxu0 %v1229_v29 }
  0x78   :  { %263 = vmatprep.subr.bf16.mxu0 %v1232_v31 }
  0x79   :  { %452 = vmatpush1.bf16.msra.mxu1 %v1222_v28 }
  0x7a   :  { %453 = vmatprep.subr.bf16.mxu1 %v1224_v30 }
  0x7b   :  { %264 = vmatpush1.bf16.msra.mxu0 %v1235_v37 }
  0x7c   :  { %265 = vmatprep.subr.bf16.mxu0 %v1238_v38 }
  0x7d   :  { %454 = vmatpush1.bf16.msra.mxu1 %v1228_v34 }
  0x7e   :  { %455 = vmatprep.subr.bf16.mxu1 %v1230_v36 }
  0x7f   :  { %266 = vmatpush1.bf16.msra.mxu0 %v1241_v42  ;;  %v1503_v42 = vmov 0.0  }
  0x80   :  { %267 = vmatprep.subr.bf16.mxu0 %v1244_v44 }
  0x81   :  { %456 = vmatpush1.bf16.msra.mxu1 %v1234_v40 }
  0x82   :  { %457 = vmatprep.subr.bf16.mxu1 %v1236_v43  ;;  %v1292_v43 = vld [vmem:[#allocation10 + $0x4] ss:$8 sps:$4 sm:$0xff]  }
  0x83   :  { %268 = vmatpush1.bf16.msra.mxu0 %v1247_v46  ;;  %v1290_v46 = vld [vmem:[#allocation10] ss:$8 sps:$4 sm:$0xff]  }
  0x84   :  { %269 = vmatprep.subr.bf16.mxu0 %v1248_v48  ;;  %v1295_v48 = vld [vmem:[#allocation10 + $0x14] ss:$8 sps:$4 sm:$0xff]  }
  0x85   :  { %458 = vmatpush1.bf16.msra.mxu1 %v1240_v45 }
  0x86   :  { %459 = vmatprep.subr.bf16.mxu1 %v1242_v47 }
  0x87   :  { %270 = vmatpush1.bf16.msra.mxu0 %v1250_v52  ;;  %v1301_v52 = vld [vmem:[#allocation10 + $0x34] ss:$8 sps:$4 sm:$0xff]  }
  0x88   :  { %271 = vmatprep.subr.bf16.mxu0 %v1251_v53  ;;  %v1299_v53 = vld [vmem:[#allocation10 + $0x30] ss:$8 sps:$4 sm:$0xff]  }
  0x89   :  { %460 = vmatpush1.bf16.msra.mxu1 %v1246_v49  ;;  %v1293_v49 = vld [vmem:[#allocation10 + $0x10] ss:$8 sps:$4 sm:$0xff]  }
  0x8b   :  { %272 = vmatpush1.bf16.msra.mxu0 %v1253_v55  ;;  %v1302_v55 = vld [vmem:[#allocation10 + $0x40] ss:$8 sps:$4 sm:$0xff]  }
  0x8c   :  { %470 = vmatmul.mubr.bf16.vlgmr.msra.gmra.mrb[0].mxu1 %v99_v54  ;;  %625 = vmatprep.subr.bf16.mxu0 %v1256_v57  ;;  %v1305_v57 = vld [vmem:[#allocation10 + $0x50] ss:$8 sps:$4 sm:$0xff]  }
  0x8d   :  { %826 = vmatprep.mubr.f32.mxu1 %v1503_v42 }
  0x8e   :  { %282 = vmatmul.mubr.bf16.vlgmr.msra.gmra.mrb[0].mxu0 %v97_v59  ;;  %v1308_v59 = vld [vmem:[#allocation10 + $0x60] ss:$8 sps:$4 sm:$0xff]  }
  0x8f   :  { %626 = vmatpush1.bf16.msra.mxu0 %v1254_v58  ;;  %1131 = vmatprep.mubr.msk.bf16.mxu0 %vm245_vm0, %v100_v35  ;;  %v1310_v58 = vld [vmem:[#allocation10 + $0x64] ss:$8 sps:$4 sm:$0xff]  }
  0x90   :  { %627 = vmatprep.subr.bf16.mxu0 %v1259_v60  ;;  %v1313_v60 = vld [vmem:[#allocation10 + $0x74] ss:$8 sps:$4 sm:$0xff]  }
  0x93   :  { %628 = vmatpush1.bf16.msra.mxu0 %v1257_v61  ;;  %v1311_v61 = vld [vmem:[#allocation10 + $0x70] ss:$8 sps:$4 sm:$0xff]  }
  0x94   :  { %629 = vmatprep.subr.bf16.mxu0 %v1262_v62  ;;  %v1316_v62 = vld [vmem:[#allocation10 + $0x84] ss:$8 sps:$4 sm:$0xff]  }
  0x97   :  { %630 = vmatpush1.bf16.msra.mxu0 %v1260_v63  ;;  %v1314_v63 = vld [vmem:[#allocation10 + $0x80] ss:$8 sps:$4 sm:$0xff]  }
  0x98   :  { %631 = vmatprep.subr.bf16.mxu0 %v1265_v0  ;;  %v1319_v0 = vld [vmem:[#allocation10 + $0x94] ss:$8 sps:$4 sm:$0xff]  }
  0x9b   :  { %632 = vmatpush1.bf16.msra.mxu0 %v1263_v1  ;;  %v1317_v1 = vld [vmem:[#allocation10 + $0x90] ss:$8 sps:$4 sm:$0xff]  }
  0x9c   :  { %633 = vmatprep.subr.bf16.mxu0 %v1268_v2  ;;  %v1322_v2 = vld [vmem:[#allocation10 + $0xa4] ss:$8 sps:$4 sm:$0xff]  }
  0x9f   :  { %634 = vmatpush1.bf16.msra.mxu0 %v1266_v3  ;;  %v1320_v3 = vld [vmem:[#allocation10 + $0xa0] ss:$8 sps:$4 sm:$0xff]  }
  0xa0   :  { %635 = vmatprep.subr.bf16.mxu0 %v1271_v4  ;;  %v1325_v4 = vld [vmem:[#allocation10 + $0xb4] ss:$8 sps:$4 sm:$0xff]  }
  0xa3   :  { %636 = vmatpush1.bf16.msra.mxu0 %v1269_v5  ;;  %v1323_v5 = vld [vmem:[#allocation10 + $0xb0] ss:$8 sps:$4 sm:$0xff]  }
  0xa4   :  { %637 = vmatprep.subr.bf16.mxu0 %v1274_v6 }
  0xa7   :  { %638 = vmatpush1.bf16.msra.mxu0 %v1272_v7 }
  0xa8   :  { %639 = vmatprep.subr.bf16.mxu0 %v1277_v8 }
  0xab   :  { %640 = vmatpush1.bf16.msra.mxu0 %v1275_v9 }
  0xac   :  { %641 = vmatprep.subr.bf16.mxu0 %v1280_v10 }
  0xaf   :  { %642 = vmatpush1.bf16.msra.mxu0 %v1278_v11 }
  0xb0   :  { %643 = vmatprep.subr.bf16.mxu0 %v1283_v12 }
  0xb3   :  { %644 = vmatpush1.bf16.msra.mxu0 %v1281_v13 }
  0xb4   :  { %645 = vmatprep.subr.bf16.mxu0 %v1286_v14 }
  0xb7   :  { %646 = vmatpush1.bf16.msra.mxu0 %v1284_v15 }
  0xb8   :  { %647 = vmatprep.subr.bf16.mxu0 %v1289_v16 }
  0xbb   :  { %648 = vmatpush1.bf16.msra.mxu0 %v1287_v17 }
  0xbe   :  { %658 = vmatmul.mubr.bf16.vlgmr.msra.gmra.mrb[4].mxu0 %v99_v54  ;;  %v1304_v54 = vld [vmem:[#allocation10 + $0x44] ss:$8 sps:$4 sm:$0xff]  }
 0x15f   :  { %v471_v18 = vpop.f32.mrb[0].mxu1 }
 0x160   :  { %v473_v19 = vpop.f32.mrb[1].mxu1 }
 0x161   :  { %v475_v20 = vpop.f32.mrb[2].mxu1  ;;  %v283_v24 = vpop.f32.mrb[0].mxu0 }
 0x162   :  { %v1164_v21 = vpack.c.bf16 %v475_v20, %v471_v18  ;;  %v477_v22 = vpop.f32.mrb[3].mxu1  ;;  %v285_v25 = vpop.f32.mrb[1].mxu0 }
 0x163   :  { %v1161_v23 = vpack.c.bf16 %v477_v22, %v473_v19  ;;  %v287_v26 = vpop.f32.mrb[2].mxu0  ;;  %1134 = vmatprep.mubr.msk.f32.mxu0 %vm245_vm0, %v285_v25 }
 0x164   :  { %v288_v27 = vpop.f32.mrb[3].mxu0 }
 0x165   :  { %1163 = vmatprep.subr.msk.bf16.mxu0 %vm1162_vm1, %v1161_v23 }
 0x166   :  { %1165 = vmatpush1.bf16.xpose.msra.mxu0 %v1164_v21 }
 0x16d   :  { %742 = vmatmul.mubr.f32.vlgmr.msra.gmra.mrb[8].mxu0 %v283_v24 }
 0x191   :  { %v659_v28 = vpop.f32.mrb[4].mxu0 }
 0x192   :  { %v661_v29 = vpop.f32.mrb[5].mxu0 }
 0x193   :  { %v663_v30 = vpop.f32.mrb[6].mxu0 }
 0x194   :  { %v1168_v31 = vpack.c.bf16 %v663_v30, %v659_v28  ;;  %v665_v32 = vpop.f32.mrb[7].mxu0 }
 0x195   :  { %v1166_v33 = vpack.c.bf16 %v665_v32, %v661_v29 }
 0x197   :  { %1167 = vmatprep.subr.bf16.mxu1 %v1166_v33 }
 0x198   :  { %1169 = vmatpush1.bf16.msra.mxu1 %v1168_v31 }
 0x199   :  { %982 = vmatprep.subr.bf16.mxu1 %v1292_v43 }
 0x240   :  { %v743_v34 = vpop.f32.mrb[8].mxu0 }
 0x241   :  { %v745_v35 = vpop.f32.mrb[9].mxu0  ;;  %v748_v36 = vsel %vm747_vm2, %v743_v34, -inf }
 0x242   :  { %749 = vmax.xlane.f32.xlu0 %v748_v36 }
 0x2cf   :  { %v750_v37 = vpop.xlane.xlu0 %749 }
 0x2d0   :  { %v751_v38 = vsub.f32 %v743_v34, %v750_v37 }
 0x2d2   :  { %v752_v39 = vmul.f32 1.442695, %v751_v38 }
 0x2d4   :  { %1326 = vpow2.f32 %v752_v39 }
 0x2de   :  { %v1327_v40 = vpop.eup %1326 }
 0x2df   :  { %v754_v41 = vsel %vm747_vm2, %v1327_v40, 0.0 }
 0x2e0   :  { %755 = vadd.xlane.f32.xlu0 %v754_v41 }
 0x36d   :  { %v756_v44 = vpop.xlane.xlu0 %755 }
 0x36e   :  { %1328 = vrcp.f32 %v756_v44 }
 0x378   :  { %v1329_v45 = vpop.eup %1328 }
 0x379   :  { %v758_v47 = vmul.f32 %v1329_v45, %v1327_v40 }
 0x37b   :  { %1025 = vst.msk [vmem:[#allocation12] sm:$0xff] %vm747_vm2, %v758_v47  ;;  %1135 = vmatmul.mubr.msk.f32.vlgmr.msra.gmra.mrb[4].mxu1 %vm747_vm2, %v758_v47 }
 0x37c   :  { %983 = vmatpush1.bf16.msra.mxu1 %v1290_v46 }
 0x37d   :  { %984 = vmatprep.subr.bf16.mxu1 %v1295_v48 }
 0x380   :  { %985 = vmatpush1.bf16.msra.mxu1 %v1293_v49 }
 0x381   :  { %986 = vmatprep.subr.bf16.mxu1 %v1298_v50 }
 0x384   :  { %987 = vmatpush1.bf16.msra.mxu1 %v1296_v51 }
 0x385   :  { %988 = vmatprep.subr.bf16.mxu1 %v1301_v52 }
 0x388   :  { %989 = vmatpush1.bf16.msra.mxu1 %v1299_v53 }
 0x389   :  { %990 = vmatprep.subr.bf16.mxu1 %v1304_v54 }
 0x38c   :  { %991 = vmatpush1.bf16.msra.mxu1 %v1302_v55 }
 0x38d   :  { %992 = vmatprep.subr.bf16.mxu1 %v1307_v56 }
 0x390   :  { %993 = vmatpush1.bf16.msra.mxu1 %v1305_v57 }
 0x391   :  { %994 = vmatprep.subr.bf16.mxu1 %v1310_v58 }
 0x394   :  { %995 = vmatpush1.bf16.msra.mxu1 %v1308_v59 }
 0x395   :  { %996 = vmatprep.subr.bf16.mxu1 %v1313_v60 }
 0x398   :  { %997 = vmatpush1.bf16.msra.mxu1 %v1311_v61 }
 0x399   :  { %998 = vmatprep.subr.bf16.mxu1 %v1316_v62 }
 0x39c   :  { %999 = vmatpush1.bf16.msra.mxu1 %v1314_v63 }
 0x39d   :  { %1000 = vmatprep.subr.bf16.mxu1 %v1319_v0 }
 0x3a0   :  { %1001 = vmatpush1.bf16.msra.mxu1 %v1317_v1 }
 0x3a1   :  { %1002 = vmatprep.subr.bf16.mxu1 %v1322_v2 }
 0x3a4   :  { %1003 = vmatpush1.bf16.msra.mxu1 %v1320_v3 }
 0x3a5   :  { %1004 = vmatprep.subr.bf16.mxu1 %v1325_v4 }
 0x3a8   :  { %1005 = vmatpush1.bf16.msra.mxu1 %v1323_v5 }
 0x44e   :  { %v828_v6 = vpop.f32.mrb[4].mxu1 }
 0x44f   :  { %v830_v7 = vpop.f32.mrb[5].mxu1  ;;  %v833_v9 = vpack.c.bf16 %v828_v6, %v828_v6 }
 0x450   :  { %v834_v8 = vpack.c.bf16 %v830_v7, %v830_v7 }
 0x452   :  { %1160 = vmatprep.mubr.msk.bf16.mxu1 %vm245_vm0, %v834_v8 }
 0x453   :  { %1015 = vmatmul.mubr.bf16.vlgmr.msra.gmra.mrb[8].mxu1 %v833_v9 }
 0x454   :  { %1451 = shalt.err (!%p1448_p2)
}
 0x455   :  { %s1452_s11 = scalar_lea.hbm %s1652_s6, 128 }
 0x456   :  { %p1453_p3 = scmp.ne.s32.totalorder %s1652_s6, %s1452_s11  ;;  %p1456_p4 = scmp.lt.u32.totalorder %s1452_s11, %s1652_s6 }
 0x458   :  { %p1458_p5 = pnand %p1456_p4, %p1453_p3 }
 0x45a   :  { %1461 = shalt.err (!%p1458_p5)
}
 0x45b   :  { %1045 = dma.vmem_to_hbm [thread:$0]  %s1043_s22, 128, %s1652_s6, [#allocation13]  }
 0x45c   :  { %s1505_s19 = smov [#allocation11]  }
 0x45d   :  { %s1032_s20 = sshll.u32 %s1505_s19, 4  ;;  %s1033_s20 = int_to_ptr.vmem [resolvable:$true] %s1032_s20 }
 0x45e   :  { %s1462_s21 = scalar_lea.vmem %s1033_s20, 256  ;;  %p1467_p7 = scmp.lt.s32.totalorder %s1033_s20, %s1033_s20 }
 0x45f   :  { %p1463_p6 = scmp.ne.s32.totalorder %s1033_s20, %s1462_s21  ;;  %p1468_p8 = scmp.lt.s32.totalorder %s1462_s21, %s1462_s21 }
 0x461   :  { %p1469_p9 = por %p1468_p8, %p1467_p7 }
 0x463   :  { %p1470_p10 = pnand %p1469_p9, %p1463_p6 }
 0x526   :  { %v1016_v10 = vpop.f32.mrb[8].mxu1 }
 0x527   :  { %1023 = vst [vmem:[#allocation11] sm:$0xff] %v1016_v10  ;;  %v1018_v11 = vpop.f32.mrb[9].mxu1 }
 0x528   :  { %1024 = vst.msk [vmem:[#allocation11 + $0x8] sm:$0xff] %vm245_vm0, %v1018_v11  ;;  %v1020_v12 = vpop.f32.mrb[10].mxu1 }
 0x529   :  { %v1021_v13 = vpop.f32.mrb[11].mxu1 }
 0x52a   :  { %1473 = shalt.err (!%p1470_p10)
}
 0x52b   :  { %s1474_s6 = scalar_lea.hbm %s1651_s5, 256 }
 0x52c   :  { %p1475_p11 = scmp.ne.s32.totalorder %s1651_s5, %s1474_s6  ;;  %p1478_p12 = scmp.lt.u32.totalorder %s1474_s6, %s1651_s5 }
 0x52e   :  { %p1480_p13 = pnand %p1478_p12, %p1475_p11 }
 0x530   :  { %1483 = shalt.err (!%p1480_p13)
}
 0x531   :  { %1035 = dma.vmem_to_hbm [thread:$0]  %s1033_s20, 256, %s1651_s5, [#allocation4]  }
 0x532   :  { %1490 = dma.done.wait [#allocation4], 256  }
 0x533   :  { %1491 = vsyncadd [#allocation4], 4294967040 }
 0x534   :  { %1492 = dma.done.wait [#allocation13], 128  }
 0x535   :  { %1493 = vsyncadd [#allocation13], 4294967168 }
 0x536   :  { %1052 = vsyncpa [#allocation3], 1 }
 0x537   :  { %1053 = vsyncpa [#allocation6], 1 }
 0x538   :  { %1054 = vsyncpa [#allocation9], 1 }
 0x539   :  { %1055 = vsyncpa [#allocation4], 1 }
 0x53a   :  { %1056 = vsyncpa [#allocation13], 1 }

</bundles_post_ra>
